<compile_context>
chip_gen: v7x
topology: tpu7x:2x2x1
jax: 0.10.0
libtpu: 0.0.40
codegen_flags: <defaults>
</compile_context>

<pallas_src>
import jax
import jax.numpy as jnp
from jax.experimental import pallas as pl
from jax.experimental.pallas import tpu as pltpu


def _embedding_kernel(ids_ref, table_ref, out_ref):
    # ids_ref:   (rows, pack)              int32  -- `pack` token ids per output row
    # table_ref: (pack*V_pad, pack*D)      table  -- block-diagonal kron(I_pack, table_pad)
    # out_ref:   (rows, pack*D)                   -- lane-dense packed embeddings
    rows, pack = ids_ref.shape
    kdim = table_ref.shape[0]
    v_pad = kdim // pack

    # One-hot over the packed contraction axis: for output row r and slot p the
    # hot lane is  p*V_pad + ids[r, p].  Built with `pack` cheap VPU compares.
    iota = jax.lax.broadcasted_iota(jnp.int32, (rows, kdim), 1)
    hit = None
    for p in range(pack):  # static, small (e.g. 4 for D=32)
        tgt = ids_ref[:, p : p + 1] + p * v_pad          # (rows, 1), lane-broadcast
        m = iota == tgt                                  # (rows, kdim) bool
        hit = m if hit is None else jnp.logical_or(hit, m)

    onehot = hit.astype(table_ref.dtype)                 # bf16 if table is bf16
    acc = jnp.dot(onehot, table_ref[...], preferred_element_type=jnp.float32)
    out_ref[...] = acc if acc.dtype == out_ref.dtype else acc.astype(out_ref.dtype)


def atom_embedding(atomic_numbers, table, *, tn=512):
    """Equivalent of AtomEmbedding.forward(atomic_numbers) -> (B, S, D)."""
    B, S = atomic_numbers.shape
    V, D = table.shape
    n = B * S

    # Tokens packed per lane-dense (128-wide) output row.
    pack = 128 // D if (D < 128 and 128 % D == 0) else 1
    # Contraction dim padded to a multiple of 128 (native MXU width).
    v_pad = max(128, ((V + 127) // 128) * 128)

    # Tokens per grid step: multiple of 8*pack (so the packed-row block has
    # >= 8 sublanes), clamped so tiny inputs don't burn work on padding.
    step_align = 8 * pack
    tn = max(step_align, (tn // step_align) * step_align)
    tn = min(tn, ((n + step_align - 1) // step_align) * step_align)

    n_pad = ((n + tn - 1) // tn) * tn
    rows_total = n_pad // pack
    rows_step = tn // pack
    n_steps = n_pad // tn

    # Lane-dense-ish id layout: one contiguous (rows_step, pack) block per step.
    ids = atomic_numbers.reshape(n).astype(jnp.int32)
    ids = jnp.pad(ids, (0, n_pad - n))
    ids2 = ids.reshape(rows_total, pack)

    # Block-diagonal table: kron(I_pack, table_pad), shape (pack*V_pad, pack*D).
    # Stays resident in VMEM (constant index_map).  For large V/D on v7x
    # (64 MiB VMEM) budget 2*pack^2*V_pad*D*itemsize + in/out tiles, or switch
    # to a gather kernel.
    table_pad = jnp.pad(table, ((0, v_pad - V), (0, 0)))
    big_table = jnp.kron(jnp.eye(pack, dtype=table.dtype), table_pad)

    out = pl.pallas_call(
        _embedding_kernel,
        out_shape=jax.ShapeDtypeStruct((rows_total, pack * D), table.dtype),
        grid_spec=pltpu.PrefetchScalarGridSpec(
            num_scalar_prefetch=0,
            grid=(n_steps,),
            in_specs=[
                pl.BlockSpec((rows_step, pack), lambda i: (i, 0)),      # ids tile
                pl.BlockSpec((pack * v_pad, pack * D), lambda i: (0, 0)),  # resident table
            ],
            out_specs=pl.BlockSpec((rows_step, pack * D), lambda i: (i, 0)),
        ),
        compiler_params=pltpu.CompilerParams(
            dimension_semantics=("parallel",)),
    )(ids2, big_table)

    # Free row-major reshapes: (rows_total, pack*D) -> (n_pad, D) -> (B, S, D).
    return out.reshape(n_pad, D)[:n].reshape(B, S, D)


if __name__ == "__main__":
    # Module config (small, consistent with nn.Embedding(num_embeddings, embedding_dim))
    num_embeddings = 16
    embedding_dim = 32
    B, S = 2, 8

    key = jax.random.PRNGKey(0)
    k_tab, k_ids = jax.random.split(key)

    # nn.Embedding weight init ~ N(0, 1), deterministic here.
    table = jax.random.normal(k_tab, (num_embeddings, embedding_dim), dtype=jnp.float32)
    atomic_numbers = jax.random.randint(k_ids, (B, S), 0, num_embeddings, dtype=jnp.int32)

    out = atom_embedding(atomic_numbers, table)
    out = jax.block_until_ready(out)

    # Reference check: plain JAX gather.
    ref = table[atomic_numbers]
    assert out.shape == (B, S, embedding_dim), out.shape
    assert jnp.allclose(out, ref, atol=1e-6), "mismatch vs reference gather"

    print("KERNEL_OK")
</pallas_src>

<mosaic_0001>
module attributes {stable_mosaic.version = 11 : i64} {
  func.func @_embedding_kernel(%arg0: i32, %arg1: memref<8x4xi32, #tpu.memory_space<vmem>>, %arg2: memref<512x128xf32, #tpu.memory_space<vmem>>, %arg3: memref<8x128xf32, #tpu.memory_space<vmem>>) attributes {dimension_semantics = [#tpu.dimension_semantics<parallel>], iteration_bounds = array<i64: 1>, scalar_prefetch = 0 : i64, scratch_operands = 0 : i64, tpu.core_type = #tpu.core_type<tc>, window_params = [{transform_indices = @transform_0, window_bounds = array<i64: 8, 4>}, {pipeline_mode = #tpu.pipeline_mode<synchronous>, transform_indices = @transform_1, window_bounds = array<i64: 512, 128>}, {transform_indices = @transform_2, window_bounds = array<i64: 8, 128>}]} {
    %0 = tpu.iota {dimensions = array<i32: 1>} : vector<8x512xi32>
    %c0 = arith.constant 0 : index
    %c0_0 = arith.constant 0 : index
    %1 = vector.load %arg1[%c0, %c0_0] : memref<8x4xi32, #tpu.memory_space<vmem>>, vector<8x1xi32>
    %c0_i32 = arith.constant 0 : i32
    %2 = vector.broadcast %c0_i32 : i32 to vector<8x1xi32>
    %3 = arith.addi %1, %2 : vector<8x1xi32>
    %4 = vector.broadcast %3 : vector<8x1xi32> to vector<8x512xi32>
    %5 = arith.cmpi eq, %0, %4 : vector<8x512xi32>
    %c0_1 = arith.constant 0 : index
    %c1 = arith.constant 1 : index
    %6 = vector.load %arg1[%c0_1, %c1] : memref<8x4xi32, #tpu.memory_space<vmem>>, vector<8x1xi32>
    %c128_i32 = arith.constant 128 : i32
    %7 = vector.broadcast %c128_i32 : i32 to vector<8x1xi32>
    %8 = arith.addi %6, %7 : vector<8x1xi32>
    %9 = vector.broadcast %8 : vector<8x1xi32> to vector<8x512xi32>
    %10 = arith.cmpi eq, %0, %9 : vector<8x512xi32>
    %11 = arith.ori %5, %10 : vector<8x512xi1>
    %c0_2 = arith.constant 0 : index
    %c2 = arith.constant 2 : index
    %12 = vector.load %arg1[%c0_2, %c2] : memref<8x4xi32, #tpu.memory_space<vmem>>, vector<8x1xi32>
    %c256_i32 = arith.constant 256 : i32
    %13 = vector.broadcast %c256_i32 : i32 to vector<8x1xi32>
    %14 = arith.addi %12, %13 : vector<8x1xi32>
    %15 = vector.broadcast %14 : vector<8x1xi32> to vector<8x512xi32>
    %16 = arith.cmpi eq, %0, %15 : vector<8x512xi32>
    %17 = arith.ori %11, %16 : vector<8x512xi1>
    %c0_3 = arith.constant 0 : index
    %c3 = arith.constant 3 : index
    %18 = vector.load %arg1[%c0_3, %c3] : memref<8x4xi32, #tpu.memory_space<vmem>>, vector<8x1xi32>
    %c384_i32 = arith.constant 384 : i32
    %19 = vector.broadcast %c384_i32 : i32 to vector<8x1xi32>
    %20 = arith.addi %18, %19 : vector<8x1xi32>
    %21 = vector.broadcast %20 : vector<8x1xi32> to vector<8x512xi32>
    %22 = arith.cmpi eq, %0, %21 : vector<8x512xi32>
    %23 = arith.ori %17, %22 : vector<8x512xi1>
    %24 = arith.extui %23 : vector<8x512xi1> to vector<8x512xi32>
    %25 = arith.sitofp %24 : vector<8x512xi32> to vector<8x512xf32>
    %c0_4 = arith.constant 0 : index
    %c0_5 = arith.constant 0 : index
    %26 = vector.load %arg2[%c0_4, %c0_5] : memref<512x128xf32, #tpu.memory_space<vmem>>, vector<512x128xf32>
    %cst = arith.constant dense<0.000000e+00> : vector<8x128xf32>
    %27 = tpu.matmul %25, %26, %cst {dimension_numbers = #tpu.dot_dimension_numbers<[1], [0], [0], [1], [0, 0, 1, 1], [], []>} : vector<8x512xf32>, vector<512x128xf32>, vector<8x128xf32> -> vector<8x128xf32>
    %c0_6 = arith.constant 0 : index
    %c0_7 = arith.constant 0 : index
    %28 = vector.load %arg3[%c0_6, %c0_7] : memref<8x128xf32, #tpu.memory_space<vmem>>, vector<8x128xf32>
    tpu.vector_store %arg3[%c0_6, %c0_7], %27 {strides = array<i32>} : memref<8x128xf32, #tpu.memory_space<vmem>>, vector<8x128xf32>,
    return
  }
  func.func @transform_0(%arg0: i32) -> (i32, i32) {
    %c0_i32 = arith.constant 0 : i32
    %c0_i32_0 = arith.constant 0 : i32
    return %arg0, %c0_i32 : i32, i32
  }
  func.func @transform_1(%arg0: i32) -> (i32, i32) {
    %c0_i32 = arith.constant 0 : i32
    %c0_i32_0 = arith.constant 0 : i32
    %c0_i32_1 = arith.constant 0 : i32
    return %c0_i32, %c0_i32_0 : i32, i32
  }
  func.func @transform_2(%arg0: i32) -> (i32, i32) {
    %c0_i32 = arith.constant 0 : i32
    %c0_i32_0 = arith.constant 0 : i32
    return %arg0, %c0_i32 : i32, i32
  }
}

</mosaic_0001>

<bundles_post_ra>
// kernel: tpu_custom_call.1
= control target key start
LH: loop header
LB: loop body
LE: loop exit
PB: predicated region body
PF: predicated region fallthrough
CT: control target
= control target key end

     0   :  { %7 = vsyncpa [#allocation3], 0  ;;  %s570_s0 = inlined_call_operand.vmem [shape: s32[8,4], index: 0, kind: input, shape index: {}]   ;;  %s571_s1 = inlined_call_operand.hbm [shape: f32[512,128], index: 1, kind: input, shape index: {}]   ;;  %s572_s2 = inlined_call_operand.hbm [shape: f32[8,128], index: 2, kind: output, shape index: {}]  }
   0x1   :  { %8 = vsyncpa [#allocation4], 0  ;;  %s507_s9 = smov [#allocation2]   ;;  %s459_s13 = scalar_lea.hbm %s571_s1, 8192 }
   0x2   :  { %s16_s10 = sshll.u32 %s507_s9, 4  ;;  %p460_p0 = scmp.ne.s32.totalorder %s571_s1, %s459_s13  ;;  %s17_s10 = int_to_ptr.vmem [resolvable:$true] %s16_s10 }
   0x3   :  { %p463_p1 = scmp.lt.u32.totalorder %s459_s13, %s571_s1 }
   0x5   :  { %p465_p2 = pnand %p463_p1, %p460_p0 }
   0x7   :  { %468 = shalt.err (!%p465_p2)
}
   0x8   :  { %s469_s18 = scalar_lea.vmem %s17_s10, 8192  ;;  %p474_p4 = scmp.lt.s32.totalorder %s17_s10, %s17_s10 }
   0x9   :  { %p470_p3 = scmp.ne.s32.totalorder %s17_s10, %s469_s18  ;;  %p475_p5 = scmp.lt.s32.totalorder %s469_s18, %s469_s18 }
   0xb   :  { %p476_p6 = por %p475_p5, %p474_p4 }
   0xd   :  { %p477_p7 = pnand %p476_p6, %p470_p3 }
   0xf   :  { %480 = shalt.err (!%p477_p7)
}
  0x10   :  { %s508_s19 = smov 128   ;;  %s509_s20 = smov 8  }
  0x11   :  { %22 = dma.hbm_to_vmem [thread:$0]  %s571_s1, 8192, %s17_s10, [#allocation3], %s508_s19, %s508_s19, %s509_s20  }
  0x12   :  { %503 = dma.done.wait [#allocation3], 8192  }
  0x13   :  { %504 = vsyncadd [#allocation3], 4294959104  ;;  %v510_v0 = vmov 0   ;;  %v511_v1 = vmov 2   ;;  %v31_v2 = vld [vmem:[%s570_s0] sm:$0xff]  ;;  %v100_v4 = vld [vmem:[#allocation2 + $0x88] sm:$0xff] }
  0x14   :  { %454 = vset.pattern.permute.xlu0 %v510_v0  ;;  %456 = vset.pattern.permute.xlu1 %v511_v1  ;;  %v99_v3 = vld [vmem:[#allocation2 + $0x80] sm:$0xff]  ;;  %v51_v5 = vadd.s32 256, %v31_v2  ;;  %v132_v8 = vld [vmem:[#allocation2 + $0x188] sm:$0xff]  ;;  %v39_v10 = vadd.s32 128, %v31_v2  ;;  %v101_v17 = vld [vmem:[#allocation2 + $0x90] sm:$0xff]  ;;  %v63_v20 = vadd.s32 384, %v31_v2 }
  0x15   :  { %33 = vperm.xlu0 %454, %v31_v2   ;;  %v381_v6 = vpack.c.bf16 %v100_v4, %v99_v3  ;;  %v131_v7 = vld [vmem:[#allocation2 + $0x180] sm:$0xff]  ;;  %v84_v12 = vld [vmem:[#allocation2 + $0x8] sm:$0xff]  ;;  %v102_v18 = vld [vmem:[#allocation2 + $0x98] sm:$0xff]  ;;  %v512_v25 = vmov 1   ;;  %v513_v35 = vmov 3   ;;  %s515_s0 = smov [#allocation5]  }
  0x16   :  { %v83_v9 = vld [vmem:[#allocation2] sm:$0xff]  ;;  %v413_v11 = vpack.c.bf16 %v132_v8, %v131_v7  ;;  %v116_v14 = vld [vmem:[#allocation2 + $0x108] sm:$0xff]  ;;  %53 = vperm.xlu1 %456, %v51_v5   ;;  %v133_v19 = vld [vmem:[#allocation2 + $0x190] sm:$0xff]  ;;  %v385_v21 = vpack.c.bf16 %v102_v18, %v101_v17  ;;  %s294_s1 = sshll.u32 %s515_s0, 4  ;;  %s295_s1 = int_to_ptr.vmem [resolvable:$true] %s294_s1 }
  0x17   :  { %v115_v13 = vld [vmem:[#allocation2 + $0x100] sm:$0xff]  ;;  %382 = vmatprep.subr.bf16.mxu0 %v381_v6  ;;  %v383_v15 = vpack.c.bf16 %v84_v12, %v83_v9  ;;  %v134_v22 = vld [vmem:[#allocation2 + $0x198] sm:$0xff]  ;;  %v85_v23 = vld [vmem:[#allocation2 + $0x10] sm:$0xff]  ;;  %s481_s25 = scalar_lea.vmem %s295_s1, 128  ;;  %p486_p9 = scmp.lt.s32.totalorder %s295_s1, %s295_s1 }
  0x18   :  { %v415_v16 = vpack.c.bf16 %v116_v14, %v115_v13  ;;  %414 = vmatprep.subr.bf16.mxu1 %v413_v11  ;;  %v86_v24 = vld [vmem:[#allocation2 + $0x18] sm:$0xff]  ;;  %v417_v26 = vpack.c.bf16 %v134_v22, %v133_v19  ;;  %v117_v28 = vld [vmem:[#allocation2 + $0x110] sm:$0xff]  ;;  %v103_v30 = vld [vmem:[#allocation2 + $0xa0] sm:$0xff]  ;;  %p482_p8 = scmp.ne.s32.totalorder %s295_s1, %s481_s25  ;;  %p487_p10 = scmp.lt.s32.totalorder %s481_s25, %s481_s25 }
  0x19   :  { %455 = vset.pattern.permute.xlu0 %v512_v25  ;;  %384 = vmatpush3.bf16.msra.mxu0 %v383_v15  ;;  %v387_v27 = vpack.c.bf16 %v86_v24, %v85_v23  ;;  %v118_v29 = vld [vmem:[#allocation2 + $0x118] sm:$0xff]  ;;  %v104_v32 = vld [vmem:[#allocation2 + $0xa8] sm:$0xff]  ;;  %v135_v33 = vld [vmem:[#allocation2 + $0x1a0] sm:$0xff] }
  0x1a   :  { %41 = vperm.xlu0 %455, %v39_v10   ;;  %416 = vmatpush3.bf16.msra.mxu1 %v415_v16  ;;  %v419_v31 = vpack.c.bf16 %v118_v29, %v117_v28  ;;  %v136_v34 = vld [vmem:[#allocation2 + $0x1a8] sm:$0xff]  ;;  %v389_v36 = vpack.c.bf16 %v104_v32, %v103_v30  ;;  %v87_v38 = vld [vmem:[#allocation2 + $0x20] sm:$0xff]  ;;  %v105_v42 = vld [vmem:[#allocation2 + $0xb0] sm:$0xff]  ;;  %p488_p11 = por %p487_p10, %p486_p9 }
  0x1b   :  { %457 = vset.pattern.permute.xlu1 %v513_v35  ;;  %386 = vmatprep.subr.bf16.mxu0 %v385_v21  ;;  %v421_v37 = vpack.c.bf16 %v136_v34, %v135_v33  ;;  %v88_v39 = vld [vmem:[#allocation2 + $0x28] sm:$0xff]  ;;  %v119_v40 = vld [vmem:[#allocation2 + $0x120] sm:$0xff]  ;;  %v106_v43 = vld [vmem:[#allocation2 + $0xb8] sm:$0xff] }
  0x1c   :  { %65 = vperm.xlu1 %457, %v63_v20   ;;  %418 = vmatprep.subr.bf16.mxu1 %v417_v26  ;;  %v120_v41 = vld [vmem:[#allocation2 + $0x128] sm:$0xff]  ;;  %v391_v44 = vpack.c.bf16 %v88_v39, %v87_v38  ;;  %v137_v45 = vld [vmem:[#allocation2 + $0x1b0] sm:$0xff]  ;;  %v138_v46 = vld [vmem:[#allocation2 + $0x1b8] sm:$0xff]  ;;  %v393_v48 = vpack.c.bf16 %v106_v43, %v105_v42  ;;  %p489_p12 = pnand %p488_p11, %p482_p8 }
  0x1d   :  { %388 = vmatpush3.bf16.msra.mxu0 %v387_v27  ;;  %v423_v47 = vpack.c.bf16 %v120_v41, %v119_v40  ;;  %v89_v49 = vld [vmem:[#allocation2 + $0x30] sm:$0xff]  ;;  %v90_v50 = vld [vmem:[#allocation2 + $0x38] sm:$0xff]  ;;  %v425_v52 = vpack.c.bf16 %v138_v46, %v137_v45  ;;  %v107_v54 = vld [vmem:[#allocation2 + $0xc0] sm:$0xff]  ;;  %v26_v40 = vlaneseq }
  0x1e   :  { %420 = vmatpush3.bf16.msra.mxu1 %v419_v31  ;;  %390 = vmatprep.subr.bf16.mxu0 %v389_v36  ;;  %v121_v51 = vld [vmem:[#allocation2 + $0x130] sm:$0xff]  ;;  %v122_v53 = vld [vmem:[#allocation2 + $0x138] sm:$0xff]  ;;  %v108_v55 = vld [vmem:[#allocation2 + $0xc8] sm:$0xff]  ;;  %v395_v58 = vpack.c.bf16 %v90_v50, %v89_v49  ;;  %v575_v50 = vmov 0 }
  0x1f   :  { %422 = vmatprep.subr.bf16.mxu1 %v421_v37  ;;  %458 = vset.pattern.permute.xlu0 %v513_v35  ;;  %v139_v56 = vld [vmem:[#allocation2 + $0x1c0] sm:$0xff]  ;;  %v140_v57 = vld [vmem:[#allocation2 + $0x1c8] sm:$0xff]  ;;  %v427_v59 = vpack.c.bf16 %v122_v53, %v121_v51  ;;  %v397_v60 = vpack.c.bf16 %v108_v55, %v107_v54  ;;  %v109_v2 = vld [vmem:[#allocation2 + $0xd0] sm:$0xff]  ;;  %v27_v41 = vand.u32 127, %v26_v40  ;;  %v514_v51 = vmov 1.0  }
  0x20   :  { %v91_v61 = vld [vmem:[#allocation2 + $0x40] sm:$0xff]  ;;  %v92_v62 = vld [vmem:[#allocation2 + $0x48] sm:$0xff]  ;;  %v429_v0 = vpack.c.bf16 %v140_v57, %v139_v56  ;;  %v110_v3 = vld [vmem:[#allocation2 + $0xd8] sm:$0xff] }
  0x21   :  { %392 = vmatpush3.bf16.msra.mxu0 %v391_v44  ;;  %v123_v63 = vld [vmem:[#allocation2 + $0x140] sm:$0xff]  ;;  %v124_v1 = vld [vmem:[#allocation2 + $0x148] sm:$0xff]  ;;  %v141_v4 = vld [vmem:[#allocation2 + $0x1d0] sm:$0xff]  ;;  %v399_v6 = vpack.c.bf16 %v92_v62, %v91_v61  ;;  %v401_v8 = vpack.c.bf16 %v110_v3, %v109_v2  ;;  %v29_v44 = vadd.s32 256, %v27_v41  ;;  %v28_v45 = vadd.s32 128, %v27_v41 }
  0x22   :  { %424 = vmatpush3.bf16.msra.mxu1 %v423_v47  ;;  %394 = vmatprep.subr.bf16.mxu0 %v393_v48  ;;  %v142_v5 = vld [vmem:[#allocation2 + $0x1d8] sm:$0xff]  ;;  %v431_v7 = vpack.c.bf16 %v124_v1, %v123_v63  ;;  %v93_v9 = vld [vmem:[#allocation2 + $0x50] sm:$0xff]  ;;  %v111_v14 = vld [vmem:[#allocation2 + $0xe0] sm:$0xff]  ;;  %v573_v47 = vmov 0  ;;  %v30_v49 = vadd.s32 384, %v27_v41 }
  0x23   :  { %426 = vmatprep.subr.bf16.mxu1 %v425_v52  ;;  %v94_v10 = vld [vmem:[#allocation2 + $0x58] sm:$0xff]  ;;  %v125_v11 = vld [vmem:[#allocation2 + $0x150] sm:$0xff]  ;;  %v433_v12 = vpack.c.bf16 %v142_v5, %v141_v4  ;;  %v112_v15 = vld [vmem:[#allocation2 + $0xe8] sm:$0xff] }
  0x24   :  { %v126_v13 = vld [vmem:[#allocation2 + $0x158] sm:$0xff]  ;;  %v143_v16 = vld [vmem:[#allocation2 + $0x1e0] sm:$0xff]  ;;  %v144_v17 = vld [vmem:[#allocation2 + $0x1e8] sm:$0xff]  ;;  %v403_v18 = vpack.c.bf16 %v94_v10, %v93_v9  ;;  %v405_v20 = vpack.c.bf16 %v112_v15, %v111_v14 }
  0x25   :  { %396 = vmatpush3.bf16.msra.mxu0 %v395_v58  ;;  %v435_v19 = vpack.c.bf16 %v126_v13, %v125_v11  ;;  %v95_v21 = vld [vmem:[#allocation2 + $0x60] sm:$0xff]  ;;  %v96_v22 = vld [vmem:[#allocation2 + $0x68] sm:$0xff]  ;;  %v437_v24 = vpack.c.bf16 %v144_v17, %v143_v16  ;;  %v113_v26 = vld [vmem:[#allocation2 + $0xf0] sm:$0xff] }
  0x26   :  { %428 = vmatpush3.bf16.msra.mxu1 %v427_v59  ;;  %398 = vmatprep.subr.bf16.mxu0 %v397_v60  ;;  %v127_v23 = vld [vmem:[#allocation2 + $0x160] sm:$0xff]  ;;  %v128_v25 = vld [vmem:[#allocation2 + $0x168] sm:$0xff]  ;;  %v114_v27 = vld [vmem:[#allocation2 + $0xf8] sm:$0xff]  ;;  %v407_v30 = vpack.c.bf16 %v96_v22, %v95_v21 }
  0x27   :  { %430 = vmatprep.subr.bf16.mxu1 %v429_v0  ;;  %v145_v28 = vld [vmem:[#allocation2 + $0x1f0] sm:$0xff]  ;;  %v146_v29 = vld [vmem:[#allocation2 + $0x1f8] sm:$0xff]  ;;  %v439_v31 = vpack.c.bf16 %v128_v25, %v127_v23  ;;  %v409_v32 = vpack.c.bf16 %v114_v27, %v113_v26 }
  0x28   :  { %v97_v33 = vld [vmem:[#allocation2 + $0x70] sm:$0xff]  ;;  %v98_v34 = vld [vmem:[#allocation2 + $0x78] sm:$0xff]  ;;  %v441_v35 = vpack.c.bf16 %v146_v29, %v145_v28 }
  0x29   :  { %400 = vmatpush3.bf16.msra.mxu0 %v399_v6  ;;  %v129_v36 = vld [vmem:[#allocation2 + $0x170] sm:$0xff]  ;;  %v130_v37 = vld [vmem:[#allocation2 + $0x178] sm:$0xff]  ;;  %v411_v38 = vpack.c.bf16 %v98_v34, %v97_v33 }
  0x2a   :  { %432 = vmatpush3.bf16.msra.mxu1 %v431_v7  ;;  %402 = vmatprep.subr.bf16.mxu0 %v401_v8  ;;  %v443_v39 = vpack.c.bf16 %v130_v37, %v129_v36 }
  0x2b   :  { %434 = vmatprep.subr.bf16.mxu1 %v433_v12 }
  0x2d   :  { %404 = vmatpush3.bf16.msra.mxu0 %v403_v18 }
  0x2e   :  { %436 = vmatpush3.bf16.msra.mxu1 %v435_v19  ;;  %406 = vmatprep.subr.bf16.mxu0 %v405_v20 }
  0x2f   :  { %438 = vmatprep.subr.bf16.mxu1 %v437_v24 }
  0x31   :  { %408 = vmatpush3.bf16.msra.mxu0 %v407_v30 }
  0x32   :  { %440 = vmatpush3.bf16.msra.mxu1 %v439_v31  ;;  %410 = vmatprep.subr.bf16.mxu0 %v409_v32 }
  0x33   :  { %442 = vmatprep.subr.bf16.mxu1 %v441_v35 }
  0x35   :  { %412 = vmatpush3.bf16.msra.mxu0 %v411_v38 }
  0x36   :  { %444 = vmatpush3.bf16.msra.mxu1 %v443_v39 }
  0x94   :  { %v34_v42 = vpop.permute.xlu0 %33 }
  0x95   :  { %v54_v43 = vpop.permute.xlu1 %53  ;;  %vm35_vm0 = vcmp.eq.s32.totalorder %v27_v41, %v34_v42  ;;  %vm37_vm4 = vcmp.eq.s32.totalorder %v29_v44, %v34_v42  ;;  %vm36_vm7 = vcmp.eq.s32.totalorder %v28_v45, %v34_v42  ;;  %vm38_vm14 = vcmp.eq.s32.totalorder %v30_v49, %v34_v42 }
  0x96   :  { %vm56_vm10 = vcmp.eq.s32.totalorder %v28_v45, %v54_v43 }
  0x99   :  { %v42_v46 = vpop.permute.xlu0 %41 }
  0x9a   :  { %vm43_vm1 = vcmp.eq.s32.totalorder %v27_v41, %v42_v46  ;;  %vm45_vm2 = vcmp.eq.s32.totalorder %v29_v44, %v42_v46  ;;  %vm44_vm3 = vcmp.eq.s32.totalorder %v28_v45, %v42_v46  ;;  %vm46_vm11 = vcmp.eq.s32.totalorder %v30_v49, %v42_v46 }
  0x9b   :  { %vm546_vm5 = vmor %vm35_vm0, %vm43_vm1  ;;  %v66_v48 = vpop.permute.xlu1 %65  ;;  %vm58_vm1 = vcmp.eq.s32.totalorder %v30_v49, %v54_v43 }
  0x9c   :  { %v574_v47 = vsel %vm546_vm5, 4294967295, %v573_v47  ;;  %vm550_vm6 = vmor %vm37_vm4, %vm45_vm2  ;;  %vm68_vm8 = vcmp.eq.s32.totalorder %v28_v45, %v66_v48  ;;  %vm70_vm15 = vcmp.eq.s32.totalorder %v30_v49, %v66_v48  ;;  %vm67_vm5 = vcmp.eq.s32.totalorder %v27_v41, %v66_v48 }
  0x9d   :  { %v576_v50 = vsel %vm550_vm6, 4294967295, %v575_v50  ;;  %vm48_vm9 = vmor %vm36_vm7, %vm44_vm3  ;;  %vm55_vm6 = vcmp.eq.s32.totalorder %v27_v41, %v54_v43  ;;  %vm69_vm3 = vcmp.eq.s32.totalorder %v29_v44, %v66_v48  ;;  %vm577_vm7 = vnez %v574_v47 }
  0x9e   :  { %vm60_vm12 = vmor %vm48_vm9, %vm56_vm10 }
  0x9f   :  { %vm72_vm13 = vmor %vm60_vm12, %vm68_vm8  ;;  %vm57_vm8 = vcmp.eq.s32.totalorder %v29_v44, %v54_v43  ;;  %vm578_vm12 = vnez %v576_v50 }
  0xa0   :  { %307 = vmatprep.mubr.msk.f32.mxu0 %vm72_vm13, %v514_v51  ;;  %vm50_vm0 = vmor %vm38_vm14, %vm46_vm11 }
  0xa1   :  { %vm62_vm2 = vmor %vm50_vm0, %vm58_vm1 }
  0xa2   :  { %vm74_vm4 = vmor %vm62_vm2, %vm70_vm15 }
  0xa3   :  { %309 = vmatprep.mubr.msk.f32.mxu1 %vm74_vm4, %v514_v51  ;;  %vm59_vm9 = vmor %vm577_vm7, %vm55_vm6 }
  0xa4   :  { %vm71_vm10 = vmor %vm59_vm9, %vm67_vm5 }
  0xa5   :  { %308 = vmatmul.mubr.msk.f32.vlgmr.msra.gmra.mrb[0].mxu0 %vm71_vm10, %v514_v51  ;;  %vm61_vm13 = vmor %vm578_vm12, %vm57_vm8 }
  0xa6   :  { %vm73_vm11 = vmor %vm61_vm13, %vm69_vm3 }
  0xa7   :  { %310 = vmatmul.mubr.msk.f32.vlgmr.msra.gmra.mrb[0].mxu1 %vm73_vm11, %v514_v51 }
 0x178   :  { %v343_v52 = vpop.f32.mrb[0].mxu0 }
 0x179   :  { %v344_v53 = vpop.f32.mrb[1].mxu0 }
 0x17a   :  { %v378_v54 = vpop.f32.mrb[0].mxu1  ;;  %v345_v55 = vadd.f32 %v344_v53, %v343_v52 }
 0x17b   :  { %v379_v56 = vpop.f32.mrb[1].mxu1 }
 0x17c   :  { %v380_v57 = vadd.f32 %v379_v56, %v378_v54 }
 0x17e   :  { %v284_v58 = vadd.f32 %v380_v57, %v345_v55 }
 0x180   :  { %287 = vst [vmem:[#allocation5] sm:$0xff] %v284_v58 }
 0x181   :  { %492 = shalt.err (!%p489_p12)
}
 0x182   :  { %s493_s28 = scalar_lea.hbm %s572_s2, 128 }
 0x183   :  { %p494_p13 = scmp.ne.s32.totalorder %s572_s2, %s493_s28  ;;  %p497_p0 = scmp.lt.u32.totalorder %s493_s28, %s572_s2 }
 0x185   :  { %p499_p1 = pnand %p497_p0, %p494_p13 }
 0x187   :  { %502 = shalt.err (!%p499_p1)
}
 0x188   :  { %297 = dma.vmem_to_hbm [thread:$0]  %s295_s1, 128, %s572_s2, [#allocation4]  }
 0x189   :  { %505 = dma.done.wait [#allocation4], 128  }
 0x18a   :  { %506 = vsyncadd [#allocation4], 4294967168 }
 0x18b   :  { %301 = vsyncpa [#allocation3], 1 }
 0x18c   :  { %302 = vsyncpa [#allocation4], 1 }

</bundles_post_ra>
